<compile_context>
chip_gen: v5e
topology: v5e:2x2
jax: 0.10.0
libtpu: 0.0.40
codegen_flags: <defaults>
</compile_context>

<pallas_src>
import functools

import jax
import jax.numpy as jnp
from jax.experimental import pallas as pl
from jax.experimental.pallas import tpu as pltpu


def _round_up(x, m):
    return (x + m - 1) // m * m


def _patch_embed_kernel(x_ref, w_ref, b_ref, cls_ref, o_ref, *, seq):
    # x_ref:   (R, K_pad)  bf16  R = BG*seq rows; row s==0 of each image is a
    #                            zero dummy row reserved for the cls token.
    # w_ref:   (K_pad, E_pad) bf16 flattened conv weight
    # b_ref:   (1, E_pad)  f32   conv bias
    # cls_ref: (1, E_pad)  f32   cls token
    # o_ref:   (R, E_pad)        projected patches with cls rows spliced in
    y = jnp.dot(x_ref[...], w_ref[...], preferred_element_type=jnp.float32)
    rows = y.shape[0]
    # Each block holds whole images, so the local row index mod seq gives the
    # sequence position; position 0 is the cls token.
    row_id = jax.lax.broadcasted_iota(jnp.int32, (rows, 1), 0)
    is_cls = (row_id % seq) == 0
    out = jnp.where(is_cls, cls_ref[...], y + b_ref[...])
    o_ref[...] = out.astype(o_ref.dtype)  # single lane/sublane-dense store


def _pick_batch_group(batch, seq, k_pad, e_pad, out_itemsize,
                      max_rows=4096, vmem_budget=24 << 20):
    """Pick images-per-grid-step BG.

    Constraints: BG divides batch; BG*seq % 8 == 0 (or BG == batch, i.e. the
    block equals the full array); per-step VMEM footprint <= vmem_budget;
    rows <= max_rows.  Prefers >= 2 grid steps (megacore) and then the
    largest rows per step (amortizes ~0.35us/step grid overhead).
    """
    def footprint(bg):
        rows = bg * seq
        return (2 * rows * k_pad * 2                 # double-buffered bf16 input
                + 2 * rows * e_pad * out_itemsize    # double-buffered output
                + rows * e_pad * 4                   # f32 GEMM intermediate
                + 2 * k_pad * e_pad * 2              # weight (double-buffered)
                + 4 * e_pad * 4)                     # bias + cls

    candidates = [d for d in range(1, batch + 1) if batch % d == 0]
    best = None
    for bg in candidates:
        rows = bg * seq
        aligned = (rows % 8 == 0) or (bg == batch)
        if not aligned or rows > max_rows or footprint(bg) > vmem_budget:
            continue
        key = (batch // bg >= 2, rows)   # prefer >=2 steps, then biggest tile
        if best is None or key > best[0]:
            best = (key, bg)
    if best is not None:
        return best[1]
    # Fallbacks: smallest 8-aligned divisor, else the full batch (block ==
    # full array dims, single grid step).
    for bg in candidates:
        if (bg * seq) % 8 == 0:
            return bg
    return batch


def patch_embedding_forward(x, conv_w, conv_b, cls_token, patch_size,
                            out_dtype=None):
    """Forward of PatchEmbedding.

    x:         (B, C, H, W)   NCHW, like PyTorch
    conv_w:    (E, C, P, P)   Conv2d weight
    conv_b:    (E,)           Conv2d bias
    cls_token: (1, 1, E)
    returns:   (B, 1 + (H//P)*(W//P), E) in out_dtype (default: x.dtype)
    """
    B, C, H, W = x.shape
    E = conv_w.shape[0]
    P = patch_size
    Hp, Wp = H // P, W // P
    N = Hp * Wp
    S = N + 1                      # cls + patches
    K = C * P * P
    K_pad = _round_up(K, 128)
    E_pad = _round_up(E, 128)
    out_dtype = x.dtype if out_dtype is None else jnp.dtype(out_dtype)
    out_itemsize = jnp.dtype(out_dtype).itemsize

    BG = _pick_batch_group(B, S, K_pad, E_pad, out_itemsize)
    rows_blk = BG * S

    # --- glue: conv-as-matmul operands (lane-aligned, bf16 for the MXU) ---
    # Patch extraction (B,C,H,W) -> (B,N,K); K ordering matches the (C,P,P)
    # flattening of the conv weight.  A zero row is prepended per image at
    # seq position 0 (the cls slot) and K is zero-padded to K_pad, then the
    # whole thing is flattened to 2D rows.  allow_input_fusion lets XLA fuse
    # this transpose/pad/cast into the pallas_call producer.
    # (Verify with an HLO dump that `patches` does not materialize in HBM.)
    xp = x.reshape(B, C, Hp, P, Wp, P)
    xp = jnp.transpose(xp, (0, 2, 4, 1, 3, 5)).reshape(B, N, K)
    patches = jnp.pad(xp, ((0, 0), (1, 0), (0, K_pad - K)))      # cls slot row = 0
    patches = patches.reshape(B * S, K_pad).astype(jnp.bfloat16)

    w_flat = jnp.pad(conv_w.reshape(E, K).T,
                     ((0, K_pad - K), (0, E_pad - E))).astype(jnp.bfloat16)
    bias2d = jnp.pad(conv_b.reshape(1, E),
                     ((0, 0), (0, E_pad - E))).astype(jnp.float32)
    cls2d = jnp.pad(cls_token.reshape(1, E),
                    ((0, 0), (0, E_pad - E))).astype(jnp.float32)

    flops = 2 * B * S * K_pad * E_pad
    bytes_accessed = (B * S * K_pad * 2            # patches (bf16)
                      + K_pad * E_pad * 2          # weight (bf16)
                      + 2 * E_pad * 4              # bias + cls
                      + B * S * E_pad * out_itemsize)  # output

    out2d = pl.pallas_call(
        functools.partial(_patch_embed_kernel, seq=S),
        out_shape=jax.ShapeDtypeStruct((B * S, E_pad), out_dtype),
        grid_spec=pltpu.PrefetchScalarGridSpec(
            num_scalar_prefetch=0,
            grid=(B // BG,),
            in_specs=[
                pl.BlockSpec((rows_blk, K_pad), lambda g: (g, 0)),
                pl.BlockSpec((K_pad, E_pad), lambda g: (0, 0)),
                pl.BlockSpec((1, E_pad), lambda g: (0, 0)),
                pl.BlockSpec((1, E_pad), lambda g: (0, 0)),
            ],
            out_specs=pl.BlockSpec((rows_blk, E_pad), lambda g: (g, 0)),
        ),
        compiler_params=pltpu.CompilerParams(
            dimension_semantics=("parallel",),
            allow_input_fusion=[True, False, False, False],
            vmem_limit_bytes=32 * 1024 * 1024,
        ),
        cost_estimate=pl.CostEstimate(
            flops=flops, transcendentals=0, bytes_accessed=bytes_accessed),
    )(patches, w_flat, bias2d, cls2d)

    out = out2d.reshape(B, S, E_pad)    # contiguous => free metadata reshape
    if E_pad != E:
        # Only hit when E is not a multiple of 128 (toy config); real ViT
        # widths (E % 128 == 0) skip this extra slice pass.
        out = out[:, :, :E]
    return out


if __name__ == "__main__":
    # Small shapes consistent with the module's forward:
    # batch=2, in_channels=4, img_size=16, patch_size=4, emb_size=32
    B, C, H, W = 2, 4, 16, 16
    P, E = 4, 32

    key = jax.random.PRNGKey(0)
    kx, kw, kb, kc = jax.random.split(key, 4)
    x = jax.random.normal(kx, (B, C, H, W), dtype=jnp.float32)
    conv_w = jax.random.normal(kw, (E, C, P, P), dtype=jnp.float32) * 0.02
    conv_b = jax.random.normal(kb, (E,), dtype=jnp.float32) * 0.02
    cls_token = jax.random.normal(kc, (1, 1, E), dtype=jnp.float32)

    N = (H // P) * (W // P)

    # Default (f32) output path.
    fwd = jax.jit(functools.partial(patch_embedding_forward, patch_size=P))
    out = jax.block_until_ready(fwd(x, conv_w, conv_b, cls_token))
    assert out.shape == (B, N + 1, E), out.shape

    # Reference: XLA conv (stride = kernel = P) + rearrange + cls concat.
    ref_conv = jax.lax.conv_general_dilated(
        x, conv_w, window_strides=(P, P), padding="VALID",
        dimension_numbers=("NCHW", "OIHW", "NCHW"),
    ) + conv_b.reshape(1, E, 1, 1)                       # (B, E, Hp, Wp)
    ref = ref_conv.reshape(B, E, N).transpose(0, 2, 1)   # b e (h w) -> b (h w) e
    ref = jnp.concatenate([jnp.broadcast_to(cls_token, (B, 1, E)), ref], axis=1)
    # bf16 MXU operands with f32 accumulation -> loosened tolerance vs f32 ref.
    assert jnp.allclose(out, ref, atol=2e-2, rtol=2e-2), (
        float(jnp.max(jnp.abs(out - ref))))

    # bf16-output variant (halves the output HBM stream on memory-bound gens).
    fwd_bf16 = jax.jit(functools.partial(
        patch_embedding_forward, patch_size=P, out_dtype=jnp.bfloat16))
    out_bf16 = jax.block_until_ready(fwd_bf16(x, conv_w, conv_b, cls_token))
    assert out_bf16.shape == (B, N + 1, E) and out_bf16.dtype == jnp.bfloat16
    assert jnp.allclose(out_bf16.astype(jnp.float32), ref, atol=5e-2, rtol=5e-2), (
        float(jnp.max(jnp.abs(out_bf16.astype(jnp.float32) - ref))))

    print("KERNEL_OK")
</pallas_src>

<mosaic_0001>
module attributes {stable_mosaic.version = 11 : i64} {
  func.func @_patch_embed_kernel(%arg0: i32, %arg1: memref<34x128xbf16, #tpu.memory_space<vmem>>, %arg2: memref<128x128xbf16, #tpu.memory_space<vmem>>, %arg3: memref<1x128xf32, #tpu.memory_space<vmem>>, %arg4: memref<1x128xf32, #tpu.memory_space<vmem>>, %arg5: memref<34x128xf32, #tpu.memory_space<vmem>>) attributes {dimension_semantics = [#tpu.dimension_semantics<parallel>], iteration_bounds = array<i64: 1>, scalar_prefetch = 0 : i64, scratch_operands = 0 : i64, tpu.core_type = #tpu.core_type<tc>, window_params = [{transform_indices = @transform_0, window_bounds = array<i64: 34, 128>}, {pipeline_mode = #tpu.pipeline_mode<synchronous>, transform_indices = @transform_1, window_bounds = array<i64: 128, 128>}, {pipeline_mode = #tpu.pipeline_mode<synchronous>, transform_indices = @transform_2, window_bounds = array<i64: 1, 128>}, {pipeline_mode = #tpu.pipeline_mode<synchronous>, transform_indices = @transform_3, window_bounds = array<i64: 1, 128>}, {transform_indices = @transform_4, window_bounds = array<i64: 34, 128>}]} {
    %c0 = arith.constant 0 : index
    %c0_0 = arith.constant 0 : index
    %0 = vector.load %arg1[%c0, %c0_0] : memref<34x128xbf16, #tpu.memory_space<vmem>>, vector<34x128xbf16>
    %c0_1 = arith.constant 0 : index
    %c0_2 = arith.constant 0 : index
    %1 = vector.load %arg2[%c0_1, %c0_2] : memref<128x128xbf16, #tpu.memory_space<vmem>>, vector<128x128xbf16>
    %cst = arith.constant dense<0.000000e+00> : vector<34x128xf32>
    %2 = tpu.matmul %0, %1, %cst {dimension_numbers = #tpu.dot_dimension_numbers<[1], [0], [0], [1], [0, 0, 1, 1], [], []>} : vector<34x128xbf16>, vector<128x128xbf16>, vector<34x128xf32> -> vector<34x128xf32>
    %3 = tpu.iota {dimensions = array<i32: 0>} : vector<34x1xi32>
    %c17_i32 = arith.constant 17 : i32
    %c0_i32 = arith.constant 0 : i32
    %4 = arith.cmpi eq, %c17_i32, %c0_i32 : i32
    %c1_i32 = arith.constant 1 : i32
    %5 = arith.select %4, %c1_i32, %c17_i32 : i32
    %6 = vector.broadcast %5 : i32 to vector<34x1xi32>
    %7 = arith.remsi %3, %6 : vector<34x1xi32>
    %c0_i32_3 = arith.constant 0 : i32
    %8 = vector.broadcast %c0_i32_3 : i32 to vector<34x1xi32>
    %9 = arith.cmpi ne, %7, %8 : vector<34x1xi32>
    %c0_i32_4 = arith.constant 0 : i32
    %10 = vector.broadcast %c0_i32_4 : i32 to vector<34x1xi32>
    %11 = arith.cmpi slt, %7, %10 : vector<34x1xi32>
    %c0_i32_5 = arith.constant 0 : i32
    %12 = arith.cmpi slt, %5, %c0_i32_5 : i32
    %13 = vector.broadcast %12 : i1 to vector<34x1xi1>
    %14 = vector.broadcast %13 : vector<34x1xi1> to vector<34x1xi1>
    %15 = arith.xori %11, %14 : vector<34x1xi1>
    %16 = arith.andi %15, %9 : vector<34x1xi1>
    %17 = vector.broadcast %5 : i32 to vector<34x1xi32>
    %18 = arith.addi %7, %17 : vector<34x1xi32>
    %19 = arith.select %16, %18, %7 : vector<34x1xi1>, vector<34x1xi32>
    %c0_i32_6 = arith.constant 0 : i32
    %20 = vector.broadcast %c0_i32_6 : i32 to vector<34x1xi32>
    %21 = arith.cmpi eq, %19, %20 : vector<34x1xi32>
    %c0_7 = arith.constant 0 : index
    %c0_8 = arith.constant 0 : index
    %22 = vector.load %arg4[%c0_7, %c0_8] : memref<1x128xf32, #tpu.memory_space<vmem>>, vector<1x128xf32>
    %c0_9 = arith.constant 0 : index
    %c0_10 = arith.constant 0 : index
    %23 = vector.load %arg3[%c0_9, %c0_10] : memref<1x128xf32, #tpu.memory_space<vmem>>, vector<1x128xf32>
    %24 = vector.broadcast %23 : vector<1x128xf32> to vector<34x128xf32>
    %25 = arith.addf %2, %24 : vector<34x128xf32>
    %26 = vector.shape_cast %21 : vector<34x1xi1> to vector<34x1xi1>
    %27 = vector.broadcast %26 : vector<34x1xi1> to vector<34x128xi1>
    %28 = vector.shape_cast %22 : vector<1x128xf32> to vector<1x128xf32>
    %29 = vector.broadcast %28 : vector<1x128xf32> to vector<34x128xf32>
    %30 = arith.select %27, %29, %25 : vector<34x128xi1>, vector<34x128xf32>
    %c0_11 = arith.constant 0 : index
    %c0_12 = arith.constant 0 : index
    %31 = vector.load %arg5[%c0_11, %c0_12] : memref<34x128xf32, #tpu.memory_space<vmem>>, vector<34x128xf32>
    tpu.vector_store %arg5[%c0_11, %c0_12], %30 {strides = array<i32>} : memref<34x128xf32, #tpu.memory_space<vmem>>, vector<34x128xf32>,
    return
  }
  func.func @transform_0(%arg0: i32) -> (i32, i32) {
    %c0_i32 = arith.constant 0 : i32
    %c0_i32_0 = arith.constant 0 : i32
    return %arg0, %c0_i32 : i32, i32
  }
  func.func @transform_1(%arg0: i32) -> (i32, i32) {
    %c0_i32 = arith.constant 0 : i32
    %c0_i32_0 = arith.constant 0 : i32
    %c0_i32_1 = arith.constant 0 : i32
    return %c0_i32, %c0_i32_0 : i32, i32
  }
  func.func @transform_2(%arg0: i32) -> (i32, i32) {
    %c0_i32 = arith.constant 0 : i32
    %c0_i32_0 = arith.constant 0 : i32
    %c0_i32_1 = arith.constant 0 : i32
    return %c0_i32, %c0_i32_0 : i32, i32
  }
  func.func @transform_3(%arg0: i32) -> (i32, i32) {
    %c0_i32 = arith.constant 0 : i32
    %c0_i32_0 = arith.constant 0 : i32
    %c0_i32_1 = arith.constant 0 : i32
    return %c0_i32, %c0_i32_0 : i32, i32
  }
  func.func @transform_4(%arg0: i32) -> (i32, i32) {
    %c0_i32 = arith.constant 0 : i32
    %c0_i32_0 = arith.constant 0 : i32
    return %arg0, %c0_i32 : i32, i32
  }
}

</mosaic_0001>

<bundles_post_ra>
// kernel: patch_embedding_forward.1
= control target key start
LH: loop header
LB: loop body
LE: loop exit
PB: predicated region body
PF: predicated region fallthrough
CT: control target
= control target key end

     0   :  { %v38_v13 = vlaneseq  ;;  %v407_v41 = vmov 0   ;;  %s560_s1 = inlined_call_operand.vmem [shape: bf16[128,128], index: 1, kind: input, shape index: {}]   ;;  %s561_s3 = inlined_call_operand.vmem [shape: f32[1,128], index: 3, kind: input, shape index: {}]   ;;  %s562_s2 = inlined_call_operand.vmem [shape: f32[1,128], index: 2, kind: input, shape index: {}]   ;;  %s563_s0 = inlined_call_operand.vmem [shape: bf16[34,128], index: 0, kind: input, shape index: {}]   ;;  %s564_s4 = inlined_call_operand.vmem [shape: f32[34,128], index: 4, kind: output, shape index: {}]  }
   0x1   :  { %v387_v0 = vld [vmem:[%s560_s1 + $0x38] sm:$0xff]  ;;  %v386_v1 = vld [vmem:[%s560_s1 + $0x30] sm:$0xff]  ;;  %v385_v2 = vld [vmem:[%s560_s1 + $0x28] sm:$0xff] }
   0x2   :  { %288 = vmatpush.bf16.msra.mxu0 %v387_v0  ;;  %388 = vmatpush.bf16.msra.mxu1 %v387_v0  ;;  %v384_v3 = vld [vmem:[%s560_s1 + $0x20] sm:$0xff]  ;;  %v383_v4 = vld [vmem:[%s560_s1 + $0x18] sm:$0xff]  ;;  %v382_v5 = vld [vmem:[%s560_s1 + $0x10] sm:$0xff]  ;;  %v466_v14 = vshrl.u32 %v38_v13, 7 }
   0x3   :  { %389 = vmatpush.bf16.msra.mxu2 %v387_v0  ;;  %v381_v6 = vld [vmem:[%s560_s1 + $0x8] sm:$0xff]  ;;  %v21_v7 = vld [vmem:[%s563_s0 + $0x10] sm:$0x1]  ;;  %v380_v8 = vld [vmem:[%s560_s1] sm:$0xff] }
   0x4   :  { %v233_v9 = vunpack.c.l.b16 %v21_v7  ;;  %v378_v10 = vld [vmem:[%s563_s0] sm:$0xff]  ;;  %v379_v11 = vld [vmem:[%s563_s0 + $0x8] sm:$0xff]  ;;  %v47_v15 = vand.u32 65535, %v466_v14  ;;  %v48_v16 = vshrl.u32 %v466_v14, 16  ;;  %v473_v18 = vadd.s32 16, %v466_v14 }
   0x5   :  { %v483_v25 = vadd.s32 32, %v466_v14  ;;  %v490_v30 = vadd.s32 8, %v466_v14  ;;  %v502_v44 = vadd.s32 24, %v466_v14 }
   0x6   :  { %289 = vmatpush.bf16.msra.mxu0 %v386_v1  ;;  %390 = vmatpush.bf16.msra.mxu1 %v386_v1  ;;  %v236_v12 = vpack.c.b16 %v233_v9, %v233_v9  ;;  %v470_v17 = vmul.u32 61680, %v47_v15  ;;  %v105_v19 = vand.u32 65535, %v473_v18  ;;  %v50_v20 = vmul.u32 61681, %v47_v15 }
   0x7   :  { %391 = vmatpush.bf16.msra.mxu2 %v386_v1  ;;  %v476_v21 = vmul.u32 61681, %v48_v16  ;;  %v106_v23 = vshrl.u32 %v473_v18, 16  ;;  %v163_v28 = vand.u32 65535, %v483_v25  ;;  %v164_v33 = vshrl.u32 %v483_v25, 16 }
   0x8   :  { %v54_v22 = vshll.u32 %v470_v17, 16  ;;  %v480_v24 = vmul.u32 61680, %v105_v19  ;;  %v108_v26 = vmul.u32 61681, %v105_v19  ;;  %v76_v35 = vand.u32 65535, %v490_v30 }
   0x9   :  { %v487_v29 = vmul.u32 61681, %v106_v23  ;;  %v56_v31 = vshll.u32 %v476_v21, 16  ;;  %v494_v34 = vmul.u32 61680, %v163_v28  ;;  %v77_v36 = vshrl.u32 %v490_v30, 16 }
   0xa   :  { %290 = vmatpush.bf16.msra.mxu0 %v385_v2  ;;  %392 = vmatpush.bf16.msra.mxu1 %v385_v2  ;;  %v112_v27 = vshll.u32 %v480_v24, 16  ;;  %v60_v32 = vadd.s32 %v54_v22, %v50_v20  ;;  %vm58_vm0 = vc.u32 %v50_v20, %v54_v22  ;;  %v53_v37 = vmul.u32 61680, %v48_v16 }
   0xb   :  { %393 = vmatpush.bf16.msra.mxu2 %v385_v2  ;;  %v114_v38 = vshll.u32 %v487_v29, 16  ;;  %v499_v40 = vmul.u32 61680, %v76_v35  ;;  %v59_v42 = vsel %vm58_vm0, 1, %v407_v41  ;;  %v111_v43 = vmul.u32 61680, %v106_v23 }
   0xc   :  { %vm116_vm1 = vc.u32 %v108_v26, %v112_v27  ;;  %v118_v39 = vadd.s32 %v112_v27, %v108_v26  ;;  %vm62_vm2 = vc.u32 %v60_v32, %v56_v31  ;;  %v166_v46 = vmul.u32 61681, %v163_v28 }
   0xd   :  { %v117_v45 = vsel %vm116_vm1, 1, %v407_v41  ;;  %v504_v47 = vmul.u32 61681, %v164_v33  ;;  %v170_v48 = vshll.u32 %v494_v34, 16  ;;  %v79_v49 = vmul.u32 61681, %v76_v35 }
   0xe   :  { %291 = vmatpush.bf16.msra.mxu0 %v384_v3  ;;  %394 = vmatpush.bf16.msra.mxu1 %v384_v3  ;;  %v507_v50 = vmul.u32 61681, %v77_v36  ;;  %v61_v51 = vadd.s32 %v59_v42, %v53_v37  ;;  %vm120_vm3 = vc.u32 %v118_v39, %v114_v38  ;;  %v83_v52 = vshll.u32 %v499_v40, 16 }
   0xf   :  { %395 = vmatpush.bf16.msra.mxu2 %v384_v3  ;;  %v63_v53 = vsel %vm62_vm2, 1, %v407_v41  ;;  %v119_v54 = vadd.s32 %v117_v45, %v111_v43  ;;  %v134_v55 = vand.u32 65535, %v502_v44  ;;  %v172_v56 = vshll.u32 %v504_v47, 16 }
  0x10   :  { %vm174_vm4 = vc.u32 %v166_v46, %v170_v48  ;;  %v176_v57 = vadd.s32 %v170_v48, %v166_v46  ;;  %v135_v58 = vshrl.u32 %v502_v44, 16  ;;  %v121_v59 = vsel %vm120_vm3, 1, %v407_v41 }
  0x11   :  { %v85_v60 = vshll.u32 %v507_v50, 16  ;;  %vm87_vm5 = vc.u32 %v79_v49, %v83_v52  ;;  %v89_v61 = vadd.s32 %v83_v52, %v79_v49  ;;  %v55_v62 = vshrl.u32 %v470_v17, 16 }
  0x12   :  { %292 = vmatpush.bf16.msra.mxu0 %v383_v4  ;;  %396 = vmatpush.bf16.msra.mxu1 %v383_v4  ;;  %v65_v63 = vadd.s32 %v63_v53, %v61_v51  ;;  %v113_v0 = vshrl.u32 %v480_v24, 16  ;;  %v169_v1 = vmul.u32 61680, %v164_v33  ;;  %v175_v2 = vsel %vm174_vm4, 1, %v407_v41 }
  0x13   :  { %397 = vmatpush.bf16.msra.mxu2 %v383_v4  ;;  %v82_v3 = vmul.u32 61680, %v77_v36  ;;  %v137_v4 = vmul.u32 61681, %v134_v55  ;;  %vm178_vm6 = vc.u32 %v176_v57, %v172_v56  ;;  %v88_v7 = vsel %vm87_vm5, 1, %v407_v41 }
  0x14   :  { %vm91_vm7 = vc.u32 %v89_v61, %v85_v60  ;;  %v140_v9 = vmul.u32 61680, %v135_v58  ;;  %v177_v13 = vadd.s32 %v175_v2, %v169_v1  ;;  %v115_v16 = vshrl.u32 %v487_v29, 16 }
  0x15   :  { %v179_v17 = vsel %vm178_vm6, 1, %v407_v41  ;;  %v90_v19 = vadd.s32 %v88_v7, %v82_v3  ;;  %v92_v22 = vsel %vm91_vm7, 1, %v407_v41  ;;  %v171_v27 = vshrl.u32 %v494_v34, 16 }
  0x16   :  { %293 = vmatpush.bf16.msra.mxu0 %v382_v5  ;;  %398 = vmatpush.bf16.msra.mxu1 %v382_v5  ;;  %v181_v28 = vadd.s32 %v179_v17, %v177_v13  ;;  %v173_v37 = vshrl.u32 %v504_v47, 16  ;;  %v86_v42 = vshrl.u32 %v507_v50, 16 }
  0x17   :  { %399 = vmatpush.bf16.msra.mxu2 %v382_v5  ;;  %v138_v5 = vmul.u32 61680, %v134_v55  ;;  %v94_v32 = vadd.s32 %v92_v22, %v90_v19 }
  0x18   :  { %v182_v38 = vadd.s32 %v181_v28, %v171_v27 }
  0x19   :  { %v142_v36 = vshrl.u32 %v138_v5, 16 }
  0x1a   :  { %294 = vmatpush.bf16.msra.mxu0 %v381_v6  ;;  %400 = vmatpush.bf16.msra.mxu1 %v381_v6  ;;  %v183_v48 = vadd.s32 %v182_v38, %v173_v37 }
  0x1b   :  { %401 = vmatpush.bf16.msra.mxu2 %v381_v6  ;;  %v123_v6 = vadd.s32 %v121_v59, %v119_v54 }
  0x1c   :  { %v184_v53 = vshrl.u32 %v183_v48, 4 }
  0x1d   :  { %v124_v20 = vadd.s32 %v123_v6, %v113_v0 }
  0x1e   :  { %295 = vmatpush.bf16.msra.mxu0 %v380_v8  ;;  %402 = vmatpush.bf16.msra.mxu1 %v380_v8  ;;  %v185_v56 = vmul.u32 17, %v184_v53 }
  0x1f   :  { %403 = vmatpush.bf16.msra.mxu2 %v380_v8  ;;  %v139_v8 = vmul.u32 61681, %v135_v58  ;;  %v125_v35 = vadd.s32 %v124_v20, %v115_v16 }
  0x20   :  { %v186_v61 = vsub.s32 %v483_v25, %v185_v56  ;;  %v406_v25 = vld [vmem:[%s561_s3] ss:$0 sm:$0xff] }
  0x21   :  { %296 = vmatmul.bf16.vlgmr.msra.gmra.mxu0 %v378_v10  ;;  %301 = vmatmul.bf16.vlgmr.msra.gmra.mxu1 %v379_v11  ;;  %v141_v10 = vshll.u32 %v138_v5, 16  ;;  %v57_v11 = vshrl.u32 %v476_v21, 16  ;;  %v143_v15 = vshll.u32 %v139_v8, 16  ;;  %v84_v21 = vshrl.u32 %v499_v40, 16 }
  0x22   :  { %306 = vmatmul.bf16.vlgmr.msra.gmra.mxu2 %v236_v12  ;;  %v66_v12 = vadd.s32 %v65_v63, %v55_v62  ;;  %v126_v45 = vshrl.u32 %v125_v35, 4  ;;  %v144_v46 = vshrl.u32 %v139_v8, 16  ;;  %v405_v63 = vld [vmem:[%s562_s2] ss:$0 sm:$0xff]  ;;  %vm193_vm0 = vcmp.ne.s32.totalorder %v186_v61, 0 }
  0x23   :  { %vm145_vm8 = vc.u32 %v137_v4, %v141_v10  ;;  %v147_v24 = vadd.s32 %v141_v10, %v137_v4  ;;  %v95_v43 = vadd.s32 %v94_v32, %v84_v21  ;;  %vm198_vm1 = vcmp.lt.s32.totalorder %v186_v61, 0 }
  0x24   :  { %v146_v23 = vsel %vm145_vm8, 1, %v407_v41  ;;  %v67_v31 = vadd.s32 %v66_v12, %v57_v11  ;;  %v127_v52 = vmul.u32 17, %v126_v45  ;;  %vm539_vm8 = vmand %vm198_vm1, %vm193_vm0  ;;  %v208_v2 = vadd.s32 17, %v186_v61 }
  0x25   :  { %v148_v26 = vadd.s32 %v146_v23, %v140_v9  ;;  %vm149_vm9 = vc.u32 %v147_v24, %v143_v15  ;;  %v96_v51 = vadd.s32 %v95_v43, %v86_v42 }
  0x26   :  { %v150_v33 = vsel %vm149_vm9, 1, %v407_v41  ;;  %v68_v39 = vshrl.u32 %v67_v31, 4  ;;  %v128_v55 = vsub.s32 %v473_v18, %v127_v52  ;;  %v213_v9 = vsel %vm539_vm8, %v208_v2, %v186_v61 }
  0x27   :  { %v152_v29 = vadd.s32 %v150_v33, %v148_v26  ;;  %v97_v54 = vshrl.u32 %v96_v51, 4 }
  0x28   :  { %v69_v49 = vmul.u32 17, %v68_v39  ;;  %vm191_vm12 = vcmp.ne.s32.totalorder %v128_v55, 0  ;;  %vm196_vm13 = vcmp.lt.s32.totalorder %v128_v55, 0  ;;  %v206_v60 = vadd.s32 17, %v128_v55 }
  0x29   :  { %v153_v34 = vadd.s32 %v152_v29, %v142_v36  ;;  %v98_v50 = vmul.u32 17, %v97_v54  ;;  %vm201_vm15 = vmand %vm196_vm13, %vm191_vm12 }
  0x2a   :  { %v70_v41 = vsub.s32 %v466_v14, %v69_v49  ;;  %v211_v0 = vsel %vm201_vm15, %v206_v60, %v128_v55 }
  0x2b   :  { %v154_v40 = vadd.s32 %v153_v34, %v144_v46  ;;  %v99_v14 = vsub.s32 %v490_v30, %v98_v50  ;;  %vm216_vm7 = vcmp.eq.s32.totalorder %v211_v0, 0 }
  0x2c   :  { %vm189_vm10 = vcmp.ne.s32.totalorder %v70_v41, 0  ;;  %vm194_vm11 = vcmp.lt.s32.totalorder %v70_v41, 0  ;;  %v204_v59 = vadd.s32 17, %v70_v41 }
  0x2d   :  { %v155_v47 = vshrl.u32 %v154_v40, 4  ;;  %vm524_vm14 = vmand %vm194_vm11, %vm189_vm10  ;;  %vm190_vm2 = vcmp.ne.s32.totalorder %v99_v14, 0  ;;  %vm195_vm3 = vcmp.lt.s32.totalorder %v99_v14, 0  ;;  %v205_v5 = vadd.s32 17, %v99_v14 }
  0x2e   :  { %v209_v62 = vsel %vm524_vm14, %v204_v59, %v70_v41  ;;  %vm200_vm9 = vmand %vm195_vm3, %vm190_vm2  ;;  %vm218_vm11 = vcmp.eq.s32.totalorder %v213_v9, 0 }
  0x2f   :  { %v156_v57 = vmul.u32 17, %v155_v47  ;;  %vm214_vm6 = vcmp.eq.s32.totalorder %v209_v62, 0  ;;  %v210_v10 = vsel %vm200_vm9, %v205_v5, %v99_v14 }
  0x30   :  { %vm215_vm12 = vcmp.eq.s32.totalorder %v210_v10, 0 }
  0x31   :  { %v157_v18 = vsub.s32 %v502_v44, %v156_v57 }
  0x33   :  { %vm192_vm4 = vcmp.ne.s32.totalorder %v157_v18, 0  ;;  %vm197_vm5 = vcmp.lt.s32.totalorder %v157_v18, 0  ;;  %v207_v6 = vadd.s32 17, %v157_v18 }
  0x34   :  { %vm202_vm10 = vmand %vm197_vm5, %vm192_vm4 }
  0x35   :  { %v212_v11 = vsel %vm202_vm10, %v207_v6, %v157_v18 }
  0x36   :  { %vm217_vm13 = vcmp.eq.s32.totalorder %v212_v11, 0 }
  0x9e   :  { %v297_v30 = vpop.f32.mrf.mxu0  ;;  %v302_v44 = vpop.f32.mrf.mxu1 }
  0x9f   :  { %v298_v3 = vadd.f32 %v405_v63, %v297_v30  ;;  %v303_v4 = vadd.f32 %v405_v63, %v302_v44 }
  0xa1   :  { %v324_v7 = vsel %vm214_vm6, %v406_v25, %v298_v3  ;;  %v326_v8 = vsel %vm216_vm7, %v406_v25, %v303_v4 }
  0xa2   :  { %329 = vst [vmem:[%s564_s4] sm:$0xff] %v324_v7 }
  0xa3   :  { %331 = vst [vmem:[%s564_s4 + $0x10] sm:$0xff] %v326_v8 }
  0xa5   :  { %v307_v12 = vpop.f32.mrf.mxu2 }
  0xa6   :  { %v308_v13 = vadd.f32 %v405_v63, %v307_v12  ;;  %v299_v15 = vpop.f32.mrf.mxu0  ;;  %v304_v16 = vpop.f32.mrf.mxu1 }
  0xa7   :  { %v300_v17 = vadd.f32 %v405_v63, %v299_v15  ;;  %v305_v19 = vadd.f32 %v405_v63, %v304_v16 }
  0xa8   :  { %v328_v20 = vsel %vm218_vm11, %v406_v25, %v308_v13 }
  0xa9   :  { %333 = vst [vmem:[%s564_s4 + $0x20] sm:$0x3] %v328_v20  ;;  %v325_v22 = vsel %vm215_vm12, %v406_v25, %v300_v17  ;;  %v327_v23 = vsel %vm217_vm13, %v406_v25, %v305_v19 }
  0xaa   :  { %330 = vst [vmem:[%s564_s4 + $0x8] sm:$0xff] %v325_v22 }
  0xab   :  { %332 = vst [vmem:[%s564_s4 + $0x18] sm:$0xff] %v327_v23 }
  0xad   :  { %v309_v24 = vpop.f32.mrf.mxu2 }

</bundles_post_ra>
